<compile_context>
chip_gen: v7x
topology: tpu7x:2x2x1
jax: 0.10.0
libtpu: 0.0.40
codegen_flags: <defaults>
</compile_context>

<pallas_src>
import functools

import jax
import jax.numpy as jnp
import numpy as np
from jax.experimental import pallas as pl
from jax.experimental.pallas import tpu as pltpu


def _prm_kernel(has_ref, needs_mask, V, labels_smem, *refs):
    if has_ref:
        (logits_ref, ref_logits_ref, tokens_ref, masks_ref, out_ref,
         m_pol, l_pol, t_pol, m_ref, l_ref, t_ref) = refs
    else:
        (logits_ref, tokens_ref, masks_ref, out_ref,
         m_pol, l_pol, t_pol) = refs
        ref_logits_ref = m_ref = l_ref = t_ref = None

    b = pl.program_id(0)
    v = pl.program_id(1)
    nv = pl.num_programs(1)

    S = logits_ref.shape[1]
    TV = logits_ref.shape[2]

    v_start = v * TV
    # Compare local lane index against (token - v_start): avoids adding
    # v_start to a full (S, TV) iota (one fewer VALU op per element).
    tok_local = jnp.maximum(tokens_ref[0], 0) - v_start          # (S, 1) int32

    @pl.when(v == 0)
    def _():
        m_pol[...] = jnp.full_like(m_pol, -jnp.inf)
        l_pol[...] = jnp.zeros_like(l_pol)
        t_pol[...] = jnp.zeros_like(t_pol)
        if has_ref:
            m_ref[...] = jnp.full_like(m_ref, -jnp.inf)
            l_ref[...] = jnp.zeros_like(l_ref)
            t_ref[...] = jnp.zeros_like(t_ref)

    def online_update(z_ref, m_sc, l_sc, t_sc):
        m_old = m_sc[...]

        # Pass 1: tile max off its own read of the VMEM ref (raw input dtype,
        # no long-lived f32 copy of the whole tile).
        z1 = z_ref[0]
        if needs_mask:
            lane1 = jax.lax.broadcasted_iota(jnp.int32, (S, TV), 1)
            z1 = jnp.where(lane1 < (V - v_start), z1,
                           jnp.array(-jnp.inf, dtype=z1.dtype))
        m_new = jnp.maximum(
            m_old, jnp.max(z1, axis=-1, keepdims=True).astype(jnp.float32))

        # Pass 2: one f32 cast of a second read, shared by the exp-sum and the
        # token-select-sum.
        lane = jax.lax.broadcasted_iota(jnp.int32, (S, TV), 1)
        z = z_ref[0].astype(jnp.float32)
        e = jnp.exp(z - m_new)
        if needs_mask:
            e = jnp.where(lane < (V - v_start), e, 0.0)
        l_sc[...] = (l_sc[...] * jnp.exp(m_old - m_new)
                     + jnp.sum(e, axis=-1, keepdims=True))
        # The token logit lives in exactly one vocab tile (padded lanes can
        # never match tok_local, which is < V - v_start).
        t_sc[...] += jnp.sum(jnp.where(lane == tok_local, z, 0.0),
                             axis=-1, keepdims=True)
        m_sc[...] = m_new

    online_update(logits_ref, m_pol, l_pol, t_pol)
    if has_ref:
        online_update(ref_logits_ref, m_ref, l_ref, t_ref)

    @pl.when(v == nv - 1)
    def _():
        msk = masks_ref[0].astype(jnp.float32)                    # (S, 1)
        lp = t_pol[...] - (m_pol[...] + jnp.log(l_pol[...]))      # token log-probs
        x = jnp.sum(lp * msk)
        if has_ref:
            lp_r = t_ref[...] - (m_ref[...] + jnp.log(l_ref[...]))
            lp_r = jnp.clip(lp_r, -1.0e5, 1.0e5)
            x = x - jnp.sum(lp_r * msk)
        else:
            # TODO(synk): confirm PyTorch semantics when the reference model is
            # absent; here the reference contribution is dropped (not treated
            # as zero logits).
            pass
        t = labels_smem[b]
        # numerically stable binary_cross_entropy_with_logits
        bce = jnp.maximum(x, 0.0) - x * t + jnp.log1p(jnp.exp(-jnp.abs(x)))
        out_ref[...] = jnp.reshape(bce, (1, 1, 1))


# Total VMEM target for all kernel buffers.  Safe on v7x (64 MiB physical) and
# well within v5e/v6e (128 MiB physical); passed explicitly as vmem_limit_bytes
# so the per-generation scoped defaults (16 MiB v5e, 32 MiB v6e/v7x) never
# silently constrain the tile size.
_TARGET_VMEM_BYTES = 40 << 20


def _pick_vocab_tile(S, V, itemsize, n_big, fixed_bytes,
                     target_bytes=_TARGET_VMEM_BYTES):
    """Largest power-of-two (x128) vocab tile whose double-buffered big-input
    blocks (n_big inputs x 2 pipeline buffers) fit the VMEM target after
    subtracting fixed (scratch + small-block) usage."""
    budget = max(target_bytes - fixed_bytes, 4 << 20)
    sub = max(8, 32 // itemsize)                 # sublane packing of the dtype
    s_pad = ((S + sub - 1) // sub) * sub
    max_tv = max(128, budget // (n_big * 2 * s_pad * itemsize))
    tv = 128
    while tv * 2 <= max_tv:
        tv *= 2
    return V if tv >= V else tv                  # whole-vocab block if it fits


def implicit_prm_loss(logits, tokens, labels, masks=None, ref_logits=None,
                      vocab_tile=None):
    """Pallas implementation of the implicit-PRM loss forward (beta unused)."""
    B, S, V = logits.shape
    if masks is None:
        masks = jnp.ones((B, S), dtype=jnp.float32)

    has_ref = ref_logits is not None
    n_big = 2 if has_ref else 1
    n_scratch = 6 if has_ref else 3
    itemsize = int(jnp.dtype(logits.dtype).itemsize)

    # Fixed VMEM usage independent of TV: (S,1) scratch + small (1,S,1) blocks
    # (all lane-padded to 128) + headroom for compiler-internal scratch.
    s_pad8 = ((S + 7) // 8) * 8
    scratch_bytes = n_scratch * s_pad8 * 128 * 4
    small_bytes = 2 * 2 * s_pad8 * 128 * 4 + 8 * 128 * 4
    headroom = 2 << 20
    fixed_bytes = scratch_bytes + small_bytes + headroom

    if vocab_tile is not None:
        TV = min(vocab_tile, V)
    else:
        TV = _pick_vocab_tile(S, V, itemsize, n_big, fixed_bytes)
    nv = pl.cdiv(V, TV)
    needs_mask = (V % TV) != 0

    tokens3 = tokens.astype(jnp.int32).reshape(B, S, 1)
    masks3 = masks.astype(jnp.float32).reshape(B, S, 1)
    labels_f = labels.astype(jnp.float32).reshape(B)

    big_spec = pl.BlockSpec((1, S, TV), lambda b, v: (b, 0, v))
    small_spec = pl.BlockSpec((1, S, 1), lambda b, v: (b, 0, 0))
    smem_spec = pl.BlockSpec(memory_space=pltpu.MemorySpace.SMEM)

    if has_ref:
        in_specs = [smem_spec, big_spec, big_spec, small_spec, small_spec]
        args = (labels_f, logits, ref_logits, tokens3, masks3)
    else:
        in_specs = [smem_spec, big_spec, small_spec, small_spec]
        args = (labels_f, logits, tokens3, masks3)

    # Explicit VMEM limit from the actual buffer math.
    sub = max(8, 32 // itemsize)
    s_pad = ((S + sub - 1) // sub) * sub
    tv_pad = ((TV + 127) // 128) * 128
    big_bytes = n_big * 2 * s_pad * tv_pad * itemsize
    vmem_limit = max(big_bytes + fixed_bytes, 16 << 20)

    elems = n_big * B * S * V
    cost = pl.CostEstimate(
        flops=6 * elems,
        transcendentals=elems,
        bytes_accessed=elems * itemsize + 3 * B * S * 4,
    )

    # TODO(synk): for very small B on v7x (2 TCs/chip) the batch-parallel axis
    # underutilizes the second core; splitting the vocab reduction across cores
    # with a combine step would be needed to recover that.
    per_example = pl.pallas_call(
        functools.partial(_prm_kernel, has_ref, needs_mask, V),
        out_shape=jax.ShapeDtypeStruct((B, 1, 1), jnp.float32),
        grid=(B, nv),
        in_specs=in_specs,
        out_specs=pl.BlockSpec((1, 1, 1), lambda b, v: (b, 0, 0)),
        scratch_shapes=[pltpu.VMEM((S, 1), jnp.float32)] * n_scratch,
        compiler_params=pltpu.CompilerParams(
            dimension_semantics=("parallel", "arbitrary"),
            vmem_limit_bytes=int(vmem_limit)),
        cost_estimate=cost,
    )(*args)

    return per_example.reshape(B).mean()


def _reference_loss(logits, tokens, labels, masks, ref_logits):
    """Pure-JAX reference mirroring the PyTorch module's forward."""
    def prep(z, clamp):
        lp = jax.nn.log_softmax(z.astype(jnp.float32), axis=-1)
        tok = jnp.maximum(tokens, 0)
        g = jnp.take_along_axis(lp, tok[..., None], axis=-1)[..., 0]
        if clamp:
            g = jnp.clip(g, -1.0e5, 1.0e5)
        return (g * masks.astype(jnp.float32)).sum(-1)

    x = prep(logits, False)
    if ref_logits is not None:
        x = x - prep(ref_logits, True)
    t = labels.astype(jnp.float32)
    bce = jnp.maximum(x, 0.0) - x * t + jnp.log1p(jnp.exp(-jnp.abs(x)))
    return bce.mean()


if __name__ == "__main__":
    key = jax.random.PRNGKey(0)
    k1, k2, k3, k4, k5, k6, k7, k8 = jax.random.split(key, 8)

    # Test 1: f32, with and without a reference model (V divisible by tile).
    B, S, V = 2, 8, 128
    logits = jax.random.normal(k1, (B, S, V), dtype=jnp.float32)
    ref_logits = jax.random.normal(k2, (B, S, V), dtype=jnp.float32)
    tokens = jax.random.randint(k3, (B, S), 0, V, dtype=jnp.int32)
    labels = jax.random.randint(k4, (B,), 0, 2).astype(jnp.float32)
    masks = jax.random.randint(k5, (B, S), 0, 2).astype(jnp.float32)

    loss_with_ref = implicit_prm_loss(logits, tokens, labels, masks=masks,
                                      ref_logits=ref_logits)
    loss_no_ref = implicit_prm_loss(logits, tokens, labels, masks=masks)
    jax.block_until_ready((loss_with_ref, loss_no_ref))
    np.testing.assert_allclose(
        np.asarray(loss_with_ref),
        np.asarray(_reference_loss(logits, tokens, labels, masks, ref_logits)),
        rtol=1e-4, atol=1e-4)
    np.testing.assert_allclose(
        np.asarray(loss_no_ref),
        np.asarray(_reference_loss(logits, tokens, labels, masks, None)),
        rtol=1e-4, atol=1e-4)

    # Test 2: ragged vocab (V not a multiple of the tile) exercises the cdiv
    # grid + -inf lane-masking path (tile forced small for the test).
    V2 = 200
    logits2 = jax.random.normal(k6, (B, S, V2), dtype=jnp.float32)
    ref2 = jax.random.normal(k7, (B, S, V2), dtype=jnp.float32)
    tokens2 = jax.random.randint(k8, (B, S), 0, V2, dtype=jnp.int32)
    loss2 = implicit_prm_loss(logits2, tokens2, labels, masks=masks,
                              ref_logits=ref2, vocab_tile=128)
    jax.block_until_ready(loss2)
    np.testing.assert_allclose(
        np.asarray(loss2),
        np.asarray(_reference_loss(logits2, tokens2, labels, masks, ref2)),
        rtol=1e-4, atol=1e-4)

    # Test 3: bf16 inputs (dtype-aware tiling; kernel upcasts per tile).
    logits_bf = logits.astype(jnp.bfloat16)
    ref_bf = ref_logits.astype(jnp.bfloat16)
    loss_bf = implicit_prm_loss(logits_bf, tokens, labels, masks=masks,
                                ref_logits=ref_bf)
    jax.block_until_ready(loss_bf)
    np.testing.assert_allclose(
        np.asarray(loss_bf),
        np.asarray(_reference_loss(logits_bf, tokens, labels, masks, ref_bf)),
        rtol=2e-3, atol=2e-3)

    print("KERNEL_OK")
</pallas_src>

<mosaic_0001>
module attributes {stable_mosaic.version = 11 : i64} {
  func.func @_prm_kernel(%arg0: i32, %arg1: i32, %arg2: memref<2xf32, #tpu.memory_space<smem>>, %arg3: memref<1x8x128xf32, #tpu.memory_space<vmem>>, %arg4: memref<1x8x128xf32, #tpu.memory_space<vmem>>, %arg5: memref<1x8x1xi32, #tpu.memory_space<vmem>>, %arg6: memref<1x8x1xf32, #tpu.memory_space<vmem>>, %arg7: memref<1x1x1xf32, #tpu.memory_space<vmem>>, %arg8: memref<8x1xf32, #tpu.memory_space<vmem>>, %arg9: memref<8x1xf32, #tpu.memory_space<vmem>>, %arg10: memref<8x1xf32, #tpu.memory_space<vmem>>, %arg11: memref<8x1xf32, #tpu.memory_space<vmem>>, %arg12: memref<8x1xf32, #tpu.memory_space<vmem>>, %arg13: memref<8x1xf32, #tpu.memory_space<vmem>>) attributes {dimension_semantics = [#tpu.dimension_semantics<parallel>, #tpu.dimension_semantics<arbitrary>], iteration_bounds = array<i64: 2, 1>, scalar_prefetch = 0 : i64, scratch_operands = 6 : i64, tpu.core_type = #tpu.core_type<tc>, window_params = [{transform_indices = @transform_0, window_bounds = array<i64: 2>}, {transform_indices = @transform_1, window_bounds = array<i64: 1, 8, 128>}, {transform_indices = @transform_2, window_bounds = array<i64: 1, 8, 128>}, {transform_indices = @transform_3, window_bounds = array<i64: 1, 8, 1>}, {transform_indices = @transform_4, window_bounds = array<i64: 1, 8, 1>}, {transform_indices = @transform_5, window_bounds = array<i64: 1, 1, 1>}]} {
    %c128_i32 = arith.constant 128 : i32
    %0 = arith.muli %arg1, %c128_i32 : i32
    %c0 = arith.constant 0 : index
    %c0_0 = arith.constant 0 : index
    %c0_1 = arith.constant 0 : index
    %1 = vector.load %arg5[%c0, %c0_0, %c0_1] : memref<1x8x1xi32, #tpu.memory_space<vmem>>, vector<1x8x1xi32>
    %2 = vector.shape_cast %1 : vector<1x8x1xi32> to vector<8x1xi32>
    %c0_i32 = arith.constant 0 : i32
    %3 = vector.broadcast %c0_i32 : i32 to vector<8x1xi32>
    %4 = arith.maxsi %2, %3 : vector<8x1xi32>
    %5 = vector.broadcast %0 : i32 to vector<8x1xi32>
    %6 = arith.subi %4, %5 : vector<8x1xi32>
    %c0_i32_2 = arith.constant 0 : i32
    %7 = arith.cmpi eq, %arg1, %c0_i32_2 : i32
    %8 = arith.extui %7 : i1 to i32
    %c0_i32_3 = arith.constant 0 : i32
    %9 = arith.cmpi ne, %8, %c0_i32_3 : i32
    scf.if %9 {
      %cst_49 = arith.constant 0xFF800000 : f32
      %73 = vector.broadcast %cst_49 : f32 to vector<8x1xf32>
      %c0_50 = arith.constant 0 : index
      %c0_51 = arith.constant 0 : index
      %74 = vector.load %arg8[%c0_50, %c0_51] : memref<8x1xf32, #tpu.memory_space<vmem>>, vector<8x1xf32>
      tpu.vector_store %arg8[%c0_50, %c0_51], %73 {strides = array<i32>} : memref<8x1xf32, #tpu.memory_space<vmem>>, vector<8x1xf32>,
      %cst_52 = arith.constant 0.000000e+00 : f32
      %75 = vector.broadcast %cst_52 : f32 to vector<8x1xf32>
      %c0_53 = arith.constant 0 : index
      %c0_54 = arith.constant 0 : index
      %76 = vector.load %arg9[%c0_53, %c0_54] : memref<8x1xf32, #tpu.memory_space<vmem>>, vector<8x1xf32>
      tpu.vector_store %arg9[%c0_53, %c0_54], %75 {strides = array<i32>} : memref<8x1xf32, #tpu.memory_space<vmem>>, vector<8x1xf32>,
      %cst_55 = arith.constant 0.000000e+00 : f32
      %77 = vector.broadcast %cst_55 : f32 to vector<8x1xf32>
      %c0_56 = arith.constant 0 : index
      %c0_57 = arith.constant 0 : index
      %78 = vector.load %arg10[%c0_56, %c0_57] : memref<8x1xf32, #tpu.memory_space<vmem>>, vector<8x1xf32>
      tpu.vector_store %arg10[%c0_56, %c0_57], %77 {strides = array<i32>} : memref<8x1xf32, #tpu.memory_space<vmem>>, vector<8x1xf32>,
      %cst_58 = arith.constant 0xFF800000 : f32
      %79 = vector.broadcast %cst_58 : f32 to vector<8x1xf32>
      %c0_59 = arith.constant 0 : index
      %c0_60 = arith.constant 0 : index
      %80 = vector.load %arg11[%c0_59, %c0_60] : memref<8x1xf32, #tpu.memory_space<vmem>>, vector<8x1xf32>
      tpu.vector_store %arg11[%c0_59, %c0_60], %79 {strides = array<i32>} : memref<8x1xf32, #tpu.memory_space<vmem>>, vector<8x1xf32>,
      %cst_61 = arith.constant 0.000000e+00 : f32
      %81 = vector.broadcast %cst_61 : f32 to vector<8x1xf32>
      %c0_62 = arith.constant 0 : index
      %c0_63 = arith.constant 0 : index
      %82 = vector.load %arg12[%c0_62, %c0_63] : memref<8x1xf32, #tpu.memory_space<vmem>>, vector<8x1xf32>
      tpu.vector_store %arg12[%c0_62, %c0_63], %81 {strides = array<i32>} : memref<8x1xf32, #tpu.memory_space<vmem>>, vector<8x1xf32>,
      %cst_64 = arith.constant 0.000000e+00 : f32
      %83 = vector.broadcast %cst_64 : f32 to vector<8x1xf32>
      %c0_65 = arith.constant 0 : index
      %c0_66 = arith.constant 0 : index
      %84 = vector.load %arg13[%c0_65, %c0_66] : memref<8x1xf32, #tpu.memory_space<vmem>>, vector<8x1xf32>
      tpu.vector_store %arg13[%c0_65, %c0_66], %83 {strides = array<i32>} : memref<8x1xf32, #tpu.memory_space<vmem>>, vector<8x1xf32>,
    } else {
    }
    %c0_4 = arith.constant 0 : index
    %c0_5 = arith.constant 0 : index
    %10 = vector.load %arg8[%c0_4, %c0_5] : memref<8x1xf32, #tpu.memory_space<vmem>>, vector<8x1xf32>
    %c0_6 = arith.constant 0 : index
    %c0_7 = arith.constant 0 : index
    %c0_8 = arith.constant 0 : index
    %11 = vector.load %arg3[%c0_6, %c0_7, %c0_8] : memref<1x8x128xf32, #tpu.memory_space<vmem>>, vector<1x8x128xf32>
    %12 = vector.shape_cast %11 : vector<1x8x128xf32> to vector<8x128xf32>
    %cst = arith.constant dense<0xFF800000> : vector<8xf32>
    %13 = vector.multi_reduction <maximumf>, %12, %cst [1] : vector<8x128xf32> to vector<8xf32>
    %14 = vector.shape_cast %13 : vector<8xf32> to vector<8x1xf32>
    %15 = arith.maximumf %10, %14 : vector<8x1xf32>
    %16 = tpu.iota {dimensions = array<i32: 1>} : vector<8x128xi32>
    %c0_9 = arith.constant 0 : index
    %c0_10 = arith.constant 0 : index
    %c0_11 = arith.constant 0 : index
    %17 = vector.load %arg3[%c0_9, %c0_10, %c0_11] : memref<1x8x128xf32, #tpu.memory_space<vmem>>, vector<1x8x128xf32>
    %18 = vector.shape_cast %17 : vector<1x8x128xf32> to vector<8x128xf32>
    %19 = vector.broadcast %15 : vector<8x1xf32> to vector<8x128xf32>
    %20 = arith.subf %18, %19 : vector<8x128xf32>
    %21 = math.exp %20 : vector<8x128xf32>
    %c0_12 = arith.constant 0 : index
    %c0_13 = arith.constant 0 : index
    %22 = vector.load %arg9[%c0_12, %c0_13] : memref<8x1xf32, #tpu.memory_space<vmem>>, vector<8x1xf32>
    %23 = arith.subf %10, %15 : vector<8x1xf32>
    %24 = math.exp %23 : vector<8x1xf32>
    %25 = arith.mulf %22, %24 : vector<8x1xf32>
    %cst_14 = arith.constant dense<0.000000e+00> : vector<8xf32>
    %26 = vector.multi_reduction <add>, %21, %cst_14 [1] : vector<8x128xf32> to vector<8xf32>
    %27 = vector.shape_cast %26 : vector<8xf32> to vector<8x1xf32>
    %28 = arith.addf %25, %27 : vector<8x1xf32>
    %c0_15 = arith.constant 0 : index
    %c0_16 = arith.constant 0 : index
    %29 = vector.load %arg9[%c0_15, %c0_16] : memref<8x1xf32, #tpu.memory_space<vmem>>, vector<8x1xf32>
    tpu.vector_store %arg9[%c0_15, %c0_16], %28 {strides = array<i32>} : memref<8x1xf32, #tpu.memory_space<vmem>>, vector<8x1xf32>,
    %c0_17 = arith.constant 0 : index
    %c0_18 = arith.constant 0 : index
    %30 = vector.load %arg10[%c0_17, %c0_18] : memref<8x1xf32, #tpu.memory_space<vmem>>, vector<8x1xf32>
    %31 = vector.broadcast %6 : vector<8x1xi32> to vector<8x128xi32>
    %32 = arith.cmpi eq, %16, %31 : vector<8x128xi32>
    %cst_19 = arith.constant 0.000000e+00 : f32
    %33 = vector.broadcast %cst_19 : f32 to vector<8x128xf32>
    %34 = arith.select %32, %18, %33 : vector<8x128xi1>, vector<8x128xf32>
    %cst_20 = arith.constant dense<0.000000e+00> : vector<8xf32>
    %35 = vector.multi_reduction <add>, %34, %cst_20 [1] : vector<8x128xf32> to vector<8xf32>
    %36 = vector.shape_cast %35 : vector<8xf32> to vector<8x1xf32>
    %37 = arith.addf %30, %36 : vector<8x1xf32>
    %c0_21 = arith.constant 0 : index
    %c0_22 = arith.constant 0 : index
    %38 = vector.load %arg10[%c0_21, %c0_22] : memref<8x1xf32, #tpu.memory_space<vmem>>, vector<8x1xf32>
    tpu.vector_store %arg10[%c0_21, %c0_22], %37 {strides = array<i32>} : memref<8x1xf32, #tpu.memory_space<vmem>>, vector<8x1xf32>,
    %c0_23 = arith.constant 0 : index
    %c0_24 = arith.constant 0 : index
    %39 = vector.load %arg8[%c0_23, %c0_24] : memref<8x1xf32, #tpu.memory_space<vmem>>, vector<8x1xf32>
    tpu.vector_store %arg8[%c0_23, %c0_24], %15 {strides = array<i32>} : memref<8x1xf32, #tpu.memory_space<vmem>>, vector<8x1xf32>,
    %c0_25 = arith.constant 0 : index
    %c0_26 = arith.constant 0 : index
    %40 = vector.load %arg11[%c0_25, %c0_26] : memref<8x1xf32, #tpu.memory_space<vmem>>, vector<8x1xf32>
    %c0_27 = arith.constant 0 : index
    %c0_28 = arith.constant 0 : index
    %c0_29 = arith.constant 0 : index
    %41 = vector.load %arg4[%c0_27, %c0_28, %c0_29] : memref<1x8x128xf32, #tpu.memory_space<vmem>>, vector<1x8x128xf32>
    %42 = vector.shape_cast %41 : vector<1x8x128xf32> to vector<8x128xf32>
    %cst_30 = arith.constant dense<0xFF800000> : vector<8xf32>
    %43 = vector.multi_reduction <maximumf>, %42, %cst_30 [1] : vector<8x128xf32> to vector<8xf32>
    %44 = vector.shape_cast %43 : vector<8xf32> to vector<8x1xf32>
    %45 = arith.maximumf %40, %44 : vector<8x1xf32>
    %46 = tpu.iota {dimensions = array<i32: 1>} : vector<8x128xi32>
    %c0_31 = arith.constant 0 : index
    %c0_32 = arith.constant 0 : index
    %c0_33 = arith.constant 0 : index
    %47 = vector.load %arg4[%c0_31, %c0_32, %c0_33] : memref<1x8x128xf32, #tpu.memory_space<vmem>>, vector<1x8x128xf32>
    %48 = vector.shape_cast %47 : vector<1x8x128xf32> to vector<8x128xf32>
    %49 = vector.broadcast %45 : vector<8x1xf32> to vector<8x128xf32>
    %50 = arith.subf %48, %49 : vector<8x128xf32>
    %51 = math.exp %50 : vector<8x128xf32>
    %c0_34 = arith.constant 0 : index
    %c0_35 = arith.constant 0 : index
    %52 = vector.load %arg12[%c0_34, %c0_35] : memref<8x1xf32, #tpu.memory_space<vmem>>, vector<8x1xf32>
    %53 = arith.subf %40, %45 : vector<8x1xf32>
    %54 = math.exp %53 : vector<8x1xf32>
    %55 = arith.mulf %52, %54 : vector<8x1xf32>
    %cst_36 = arith.constant dense<0.000000e+00> : vector<8xf32>
    %56 = vector.multi_reduction <add>, %51, %cst_36 [1] : vector<8x128xf32> to vector<8xf32>
    %57 = vector.shape_cast %56 : vector<8xf32> to vector<8x1xf32>
    %58 = arith.addf %55, %57 : vector<8x1xf32>
    %c0_37 = arith.constant 0 : index
    %c0_38 = arith.constant 0 : index
    %59 = vector.load %arg12[%c0_37, %c0_38] : memref<8x1xf32, #tpu.memory_space<vmem>>, vector<8x1xf32>
    tpu.vector_store %arg12[%c0_37, %c0_38], %58 {strides = array<i32>} : memref<8x1xf32, #tpu.memory_space<vmem>>, vector<8x1xf32>,
    %c0_39 = arith.constant 0 : index
    %c0_40 = arith.constant 0 : index
    %60 = vector.load %arg13[%c0_39, %c0_40] : memref<8x1xf32, #tpu.memory_space<vmem>>, vector<8x1xf32>
    %61 = vector.broadcast %6 : vector<8x1xi32> to vector<8x128xi32>
    %62 = arith.cmpi eq, %46, %61 : vector<8x128xi32>
    %cst_41 = arith.constant 0.000000e+00 : f32
    %63 = vector.broadcast %cst_41 : f32 to vector<8x128xf32>
    %64 = arith.select %62, %48, %63 : vector<8x128xi1>, vector<8x128xf32>
    %cst_42 = arith.constant dense<0.000000e+00> : vector<8xf32>
    %65 = vector.multi_reduction <add>, %64, %cst_42 [1] : vector<8x128xf32> to vector<8xf32>
    %66 = vector.shape_cast %65 : vector<8xf32> to vector<8x1xf32>
    %67 = arith.addf %60, %66 : vector<8x1xf32>
    %c0_43 = arith.constant 0 : index
    %c0_44 = arith.constant 0 : index
    %68 = vector.load %arg13[%c0_43, %c0_44] : memref<8x1xf32, #tpu.memory_space<vmem>>, vector<8x1xf32>
    tpu.vector_store %arg13[%c0_43, %c0_44], %67 {strides = array<i32>} : memref<8x1xf32, #tpu.memory_space<vmem>>, vector<8x1xf32>,
    %c0_45 = arith.constant 0 : index
    %c0_46 = arith.constant 0 : index
    %69 = vector.load %arg11[%c0_45, %c0_46] : memref<8x1xf32, #tpu.memory_space<vmem>>, vector<8x1xf32>
    tpu.vector_store %arg11[%c0_45, %c0_46], %45 {strides = array<i32>} : memref<8x1xf32, #tpu.memory_space<vmem>>, vector<8x1xf32>,
    %c0_i32_47 = arith.constant 0 : i32
    %70 = arith.cmpi eq, %arg1, %c0_i32_47 : i32
    %71 = arith.extui %70 : i1 to i32
    %c0_i32_48 = arith.constant 0 : i32
    %72 = arith.cmpi ne, %71, %c0_i32_48 : i32
    scf.if %72 {
      %c0_49 = arith.constant 0 : index
      %c0_50 = arith.constant 0 : index
      %c0_51 = arith.constant 0 : index
      %73 = vector.load %arg6[%c0_49, %c0_50, %c0_51] : memref<1x8x1xf32, #tpu.memory_space<vmem>>, vector<1x8x1xf32>
      %74 = vector.shape_cast %73 : vector<1x8x1xf32> to vector<8x1xf32>
      %c0_52 = arith.constant 0 : index
      %c0_53 = arith.constant 0 : index
      %75 = vector.load %arg10[%c0_52, %c0_53] : memref<8x1xf32, #tpu.memory_space<vmem>>, vector<8x1xf32>
      %c0_54 = arith.constant 0 : index
      %c0_55 = arith.constant 0 : index
      %76 = vector.load %arg8[%c0_54, %c0_55] : memref<8x1xf32, #tpu.memory_space<vmem>>, vector<8x1xf32>
      %c0_56 = arith.constant 0 : index
      %c0_57 = arith.constant 0 : index
      %77 = vector.load %arg9[%c0_56, %c0_57] : memref<8x1xf32, #tpu.memory_space<vmem>>, vector<8x1xf32>
      %78 = math.log %77 : vector<8x1xf32>
      %79 = arith.addf %76, %78 : vector<8x1xf32>
      %80 = arith.subf %75, %79 : vector<8x1xf32>
      %81 = arith.mulf %80, %74 : vector<8x1xf32>
      %82 = vector.shape_cast %81 : vector<8x1xf32> to vector<1x8x1xf32>
      %cst_58 = arith.constant dense<0.000000e+00> : vector<1xf32>
      %83 = vector.multi_reduction <add>, %82, %cst_58 [1, 2] : vector<1x8x1xf32> to vector<1xf32>
      %84 = vector.shape_cast %83 : vector<1xf32> to vector<1x1x1xf32>
      %85 = vector.extract %84[0, 0, 0] : f32 from vector<1x1x1xf32>
      %c0_59 = arith.constant 0 : index
      %c0_60 = arith.constant 0 : index
      %86 = vector.load %arg13[%c0_59, %c0_60] : memref<8x1xf32, #tpu.memory_space<vmem>>, vector<8x1xf32>
      %c0_61 = arith.constant 0 : index
      %c0_62 = arith.constant 0 : index
      %87 = vector.load %arg11[%c0_61, %c0_62] : memref<8x1xf32, #tpu.memory_space<vmem>>, vector<8x1xf32>
      %c0_63 = arith.constant 0 : index
      %c0_64 = arith.constant 0 : index
      %88 = vector.load %arg12[%c0_63, %c0_64] : memref<8x1xf32, #tpu.memory_space<vmem>>, vector<8x1xf32>
      %89 = math.log %88 : vector<8x1xf32>
      %90 = arith.addf %87, %89 : vector<8x1xf32>
      %91 = arith.subf %86, %90 : vector<8x1xf32>
      %cst_65 = arith.constant -1.000000e+05 : f32
      %cst_66 = arith.constant 1.000000e+05 : f32
      %92 = vector.broadcast %cst_65 : f32 to vector<8x1xf32>
      %93 = arith.maximumf %92, %91 : vector<8x1xf32>
      %94 = vector.broadcast %cst_66 : f32 to vector<8x1xf32>
      %95 = arith.minimumf %94, %93 : vector<8x1xf32>
      %96 = arith.mulf %95, %74 : vector<8x1xf32>
      %97 = vector.shape_cast %96 : vector<8x1xf32> to vector<1x8x1xf32>
      %cst_67 = arith.constant dense<0.000000e+00> : vector<1xf32>
      %98 = vector.multi_reduction <add>, %97, %cst_67 [1, 2] : vector<1x8x1xf32> to vector<1xf32>
      %99 = vector.shape_cast %98 : vector<1xf32> to vector<1x1x1xf32>
      %100 = vector.extract %99[0, 0, 0] : f32 from vector<1x1x1xf32>
      %101 = arith.subf %85, %100 : f32
      %102 = arith.index_cast %arg0 : i32 to index
      %103 = memref.load %arg2[%102] : memref<2xf32, #tpu.memory_space<smem>>
      %cst_68 = arith.constant 0.000000e+00 : f32
      %104 = arith.maximumf %101, %cst_68 : f32
      %105 = arith.mulf %101, %103 : f32
      %106 = arith.subf %104, %105 : f32
      %107 = math.absf %101 : f32
      %cst_69 = arith.constant 0.000000e+00 : f32
      %108 = arith.subf %cst_69, %107 : f32
      %109 = math.exp %108 : f32
      %110 = math.log1p %109 : f32
      %111 = arith.addf %106, %110 : f32
      %112 = vector.broadcast %111 : f32 to vector<1x1x1xf32>
      %c0_70 = arith.constant 0 : index
      %c0_71 = arith.constant 0 : index
      %c0_72 = arith.constant 0 : index
      %113 = vector.load %arg7[%c0_70, %c0_71, %c0_72] : memref<1x1x1xf32, #tpu.memory_space<vmem>>, vector<1x1x1xf32>
      tpu.vector_store %arg7[%c0_70, %c0_71, %c0_72], %112 {strides = array<i32>} : memref<1x1x1xf32, #tpu.memory_space<vmem>>, vector<1x1x1xf32>,
    } else {
    }
    return
  }
  func.func @transform_0(%arg0: i32, %arg1: i32) -> i32 {
    %c0_i32 = arith.constant 0 : i32
    %c0_i32_0 = arith.constant 0 : i32
    return %c0_i32 : i32
  }
  func.func @transform_1(%arg0: i32, %arg1: i32) -> (i32, i32, i32) {
    %c0_i32 = arith.constant 0 : i32
    %c0_i32_0 = arith.constant 0 : i32
    return %arg0, %c0_i32, %arg1 : i32, i32, i32
  }
  func.func @transform_2(%arg0: i32, %arg1: i32) -> (i32, i32, i32) {
    %c0_i32 = arith.constant 0 : i32
    %c0_i32_0 = arith.constant 0 : i32
    return %arg0, %c0_i32, %arg1 : i32, i32, i32
  }
  func.func @transform_3(%arg0: i32, %arg1: i32) -> (i32, i32, i32) {
    %c0_i32 = arith.constant 0 : i32
    %c0_i32_0 = arith.constant 0 : i32
    %c0_i32_1 = arith.constant 0 : i32
    return %arg0, %c0_i32, %c0_i32_0 : i32, i32, i32
  }
  func.func @transform_4(%arg0: i32, %arg1: i32) -> (i32, i32, i32) {
    %c0_i32 = arith.constant 0 : i32
    %c0_i32_0 = arith.constant 0 : i32
    %c0_i32_1 = arith.constant 0 : i32
    return %arg0, %c0_i32, %c0_i32_0 : i32, i32, i32
  }
  func.func @transform_5(%arg0: i32, %arg1: i32) -> (i32, i32, i32) {
    %c0_i32 = arith.constant 0 : i32
    %c0_i32_0 = arith.constant 0 : i32
    %c0_i32_1 = arith.constant 0 : i32
    return %arg0, %c0_i32, %c0_i32_0 : i32, i32, i32
  }
}

</mosaic_0001>

<bundles_post_ra>
// kernel: tpu_custom_call.1
= control target key start
LH: loop header
LB: loop body
LE: loop exit
PB: predicated region body
PF: predicated region fallthrough
CT: control target
= control target key end

     0   :  { %10 = vsyncpa [#allocation9], 0  ;;  %s734_s18 = smov 0   ;;  %s736_s19 = smov 0   ;;  %s827_s0 = inlined_call_operand.vmem [shape: f32[2], index: 0, kind: input, shape index: {}]   ;;  %s828_s1 = inlined_call_operand.vmem [shape: f32[2,8,128], index: 1, kind: input, shape index: {}]   ;;  %s829_s2 = inlined_call_operand.vmem [shape: f32[2,8,128], index: 2, kind: input, shape index: {}]   ;;  %s830_s3 = inlined_call_operand.vmem [shape: s32[2,8,1], index: 3, kind: input, shape index: {}]   ;;  %s831_s4 = inlined_call_operand.vmem [shape: f32[2,8,1], index: 4, kind: input, shape index: {}]   ;;  %s832_s5 = inlined_call_operand.vmem [shape: f32[2,1,1], index: 5, kind: output, shape index: {}]  }
   0x1   :  { %s738_s20 = smov 0  }
   0x2 LB: > { %s577_s21 = sadd.s32 4294967295, %s697_s20   ;;  %s28_s22 = sadd.s32 1, %s693_s19  ;;  %s697_s20 = sphi %s738_s20, %s16_s20   ;;  %s693_s19 = sphi %s736_s19, %s836_s19   ;;  %s689_s18 = sphi %s734_s18, %s835_s18  }
   0x3   : > { %p30_p0 = scmp.ge.s32.totalorder %s28_s22, 2  ;;  %p579_p1 = scmp.ge.s32.totalorder %s697_s20, 1 }
   0x4   : > { %p188_p2 = scmp.lt.s32.totalorder %s697_s20, 3  ;;  %p759_p4 = scmp.eq.s32.totalorder %s577_s21, 0 }
   0x5   : > { %s838_s22 = smov (%p30_p0, %s28_s22), 0  ;;  %s201_s27 = sshll.u32 %s827_s0, 4  ;;  %s202_s27 = int_to_ptr.vmem [resolvable:$true] %s201_s27 }
   0x6   : > { %p755_p3 = pnand %p579_p1, %p188_p2  ;;  %s656_s28 = scalar_lea.vmem %s202_s27, 16 }
   0x7   : > { %p657_p7 = scmp.ne.s32.totalorder %s202_s27, %s656_s28  ;;  %p664_p11 = scmp.lt.s32.totalorder %s202_s27, %s202_s27 }
   0x8   : > { %p603_p5 = pneg %p755_p3  ;;  %p665_p12 = scmp.lt.s32.totalorder %s656_s28, %s656_s28 }
   0xa   : > { %p604_p6 = pnand %p759_p4, %p603_p5  ;;  %p666_p13 = por %p665_p12, %p664_p11 }
   0xc   : > { %p658_p8 = pneg %p604_p6 }
   0xe   : > { %p659_p9 = pnand %p658_p8, %p657_p7 }
  0x10   : > { %p660_p10 = pneg %p659_p9 }
  0x12   : > { %p667_p0 = pnand %p666_p13, %p660_p10 }
  0x14   : > { %670 = shalt.err (!%p667_p0)
}
  0x15   : > { %s699_s29 = smov [#allocation8]   ;;  %248 = sbr.rel (%p755_p3) target bundleno = 849 (0x351), region = 40 }
  0x16   : > { %606 = dma.vmem_to_smem (!%p604_p6), %s202_s27, 16, %s699_s29, [#allocation9]  }
  0x1c   : > { %684 = dma.done.wait (%p759_p4), [#allocation9], 16  }
  0x1d   : > { %686 = vsyncadd (%p759_p4), [#allocation9], 4294967280 }
  0x1e   : > { %254 = sfence }
  0x1f   : > { %p292_p1 = scmp.lt.s32.totalorder %s689_s18, 1  ;;  %vm327_vm0 = vcmask 7168   ;;  %v700_v0 = vmov -inf   ;;  %v701_v3 = vmov 0   ;;  %v702_v4 = vmov 0.0   ;;  %s442_s29 = sld [smem:[#allocation8 + %s689_s18]] }
  0x20   : > { %331 = vst.msk [vmem:[#allocation5] sm:$0xff] %vm327_vm0, %v700_v0  ;;  %328 = vst.msk [vmem:[#allocation2] sm:$0xff] %vm327_vm0, %v700_v0  ;;  %638 = vset.pattern.permute.xlu1 %v701_v3  ;;  %639 = vset.pattern.permute.xlu0 %v701_v3  ;;  %v339_v15 = vlaneseq  ;;  %s703_s7 = smov 0.0   ;;  %vm465_vm4 = vcmask 0  }
  0x21   : > { %s780_s30 = scalar_select %p292_p1, %s689_s18, 1  ;;  %332 = vst.msk [vmem:[#allocation6] sm:$0xff] %vm327_vm0, %v702_v4  ;;  %329 = vst.msk [vmem:[#allocation3] sm:$0xff] %vm327_vm0, %v702_v4 }
  0x22   : > { %330 = vst.msk [vmem:[#allocation4] sm:$0xff] %vm327_vm0, %v702_v4  ;;  %333 = vst.msk [vmem:[#allocation7] sm:$0xff] %vm327_vm0, %v702_v4  ;;  %v340_v17 = vand.u32 127, %v339_v15 }
  0x23   : > { %s783_s6 = sshll.u32 %s780_s30, 3  ;;  %s316_s13 = scalar_lea.vmem %s832_s5, %s780_s30 }
  0x24   : > { %s305_s9 = scalar_lea.vmem %s829_s2, %s783_s6  ;;  %s298_s12 = scalar_lea.vmem %s828_s1, %s783_s6 }
  0x25   : > { %v371_v1 = vld [vmem:[%s305_s9] sm:$0xff]  ;;  %s309_s15 = scalar_lea.vmem %s830_s3, %s783_s6  ;;  %s313_s21 = scalar_lea.vmem %s831_s4, %s783_s6 }
  0x26   : > { %372 = vmax.xlane.f32.xlu0 %v371_v1  ;;  %v335_v2 = vld [vmem:[%s298_s12] sm:$0xff] }
  0x27   : > { %v318_v5 = vld [vmem:[%s309_s15] sm:$0xff]  ;;  %v370_v7 = vld [vmem:[#allocation5] sm:$0xff] }
  0x28   : > { %vm319_vm1 = vcmp.gt.s32.totalorder %v318_v5, 0  ;;  %v334_v10 = vld [vmem:[#allocation2] sm:$0xff]  ;;  %v349_v38 = vld [vmem:[#allocation3] sm:$0xff] }
  0x29   : > { %v320_v6 = vsel %vm319_vm1, %v318_v5, 0  ;;  %v359_v28 = vld [vmem:[#allocation4] sm:$0xff]  ;;  %v383_v34 = vld [vmem:[#allocation6] sm:$0xff]  ;;  %v392_v43 = vld [vmem:[#allocation7] sm:$0xff] }
  0x2a   : > { %336 = vmax.xlane.f32.xlu0 %v335_v2  ;;  %v402_v61 = vld [vmem:[%s313_s21] sm:$0xff] }
  0x40   : > { %361 = vperm.xlu0 %639, %v320_v6  }
  0xb3   : > { %v373_v8 = vpop.xlane.xlu0 %372 }
  0xb4   : > { %v374_v9 = vmax.f32 %v370_v7, %v373_v8 }
  0xb6   : > { %v384_v11 = vsub.f32 %v370_v7, %v374_v9  ;;  %398 = vst.msk [vmem:[#allocation5] sm:$0xff] %vm327_vm0, %v374_v9  ;;  %377 = vperm.xlu1 %638, %v374_v9  }
  0xb7   : > { %v337_v12 = vpop.xlane.xlu0 %336 }
  0xb8   : > { %v338_v13 = vmax.f32 %v334_v10, %v337_v12  ;;  %v385_v31 = vmul.f32 1.442695, %v384_v11 }
  0xba   : > { %v350_v14 = vsub.f32 %v334_v10, %v338_v13  ;;  %369 = vst.msk [vmem:[#allocation2] sm:$0xff] %vm327_vm0, %v338_v13  ;;  %343 = vperm.xlu1 %638, %v338_v13  }
  0xbc   : > { %v351_v32 = vmul.f32 1.442695, %v350_v14 }
  0xbd   : > { %v422_v51 = vld [vmem:[#allocation5] sm:$0xff] }
  0xbf   : > { %v362_v16 = vpop.permute.xlu0 %361 }
  0xc0   : > { %vm363_vm2 = vcmp.eq.s32.totalorder %v340_v17, %v362_v16 }
  0xc1   : > { %v364_v18 = vsel %vm363_vm2, %v335_v2, 0.0  ;;  %v393_v27 = vsel %vm363_vm2, %v371_v1, 0.0  ;;  %v404_v57 = vld [vmem:[#allocation2] sm:$0xff] }
  0xc2   : > { %365 = vadd.xlane.f32.xlu0 %v364_v18 }
 0x135   : > { %v378_v19 = vpop.permute.xlu1 %377 }
 0x136   : > { %v380_v20 = vsub.f32 %v371_v1, %v378_v19 }
 0x138   : > { %v381_v21 = vmul.f32 1.442695, %v380_v20 }
 0x139   : > { %v344_v22 = vpop.permute.xlu1 %343 }
 0x13a   : > { %640 = vpow2.f32 %v381_v21  ;;  %v346_v23 = vsub.f32 %v335_v2, %v344_v22 }
 0x13c   : > { %v347_v24 = vmul.f32 1.442695, %v346_v23 }
 0x13e   : > { %642 = vpow2.f32 %v347_v24 }
 0x13f   : > { %644 = vpow2.f32 %v385_v31 }
 0x140   : > { %646 = vpow2.f32 %v351_v32 }
 0x144   : > { %v641_v25 = vpop.eup %640 }
 0x145   : > { %388 = vadd.xlane.f32.xlu1 %v641_v25 }
 0x148   : > { %v643_v26 = vpop.eup %642 }
 0x149   : > { %354 = vadd.xlane.f32.xlu1 %v643_v26  ;;  %v645_v33 = vpop.eup %644 }
 0x14a   : > { %v387_v35 = vmul.f32 %v645_v33, %v383_v34  ;;  %v647_v36 = vpop.eup %646 }
 0x14b   : > { %v353_v40 = vmul.f32 %v647_v36, %v349_v38 }
 0x14d   : > { %394 = vadd.xlane.f32.xlu1 %v393_v27 }
 0x14f   : > { %v366_v29 = vpop.xlane.xlu0 %365 }
 0x150   : > { %v367_v30 = vadd.f32 %v366_v29, %v359_v28 }
 0x152   : > { %368 = vst.msk [vmem:[#allocation4] sm:$0xff] %vm327_vm0, %v367_v30 }
 0x159   : > { %v403_v56 = vld [vmem:[#allocation4] sm:$0xff] }
 0x1d2   : > { %v389_v37 = vpop.xlane.xlu1 %388 }
 0x1d3   : > { %v390_v39 = vadd.f32 %v389_v37, %v387_v35 }
 0x1d5   : > { %391 = vst.msk [vmem:[#allocation6] sm:$0xff] %vm327_vm0, %v390_v39 }
 0x1d6   : > { %v355_v41 = vpop.xlane.xlu1 %354 }
 0x1d7   : > { %v356_v42 = vadd.f32 %v355_v41, %v353_v40 }
 0x1d9   : > { %358 = vst.msk [vmem:[#allocation3] sm:$0xff] %vm327_vm0, %v356_v42 }
 0x1da   : > { %v395_v44 = vpop.xlane.xlu1 %394 }
 0x1db   : > { %v396_v45 = vadd.f32 %v395_v44, %v392_v43 }
 0x1dc   : > { %v423_v46 = vld [vmem:[#allocation6] sm:$0xff] }
 0x1dd   : > { %397 = vst.msk [vmem:[#allocation7] sm:$0xff] %vm327_vm0, %v396_v45  ;;  %648 = vlog2.f32 %v423_v46 }
 0x1e0   : > { %v405_v47 = vld [vmem:[#allocation3] sm:$0xff] }
 0x1e1   : > { %650 = vlog2.f32 %v405_v47 }
 0x1e4   : > { %v421_v50 = vld [vmem:[#allocation7] sm:$0xff] }
 0x1e7   : > { %v649_v48 = vpop.eup %648 }
 0x1e8   : > { %v425_v49 = vmul.f32 0.6931472, %v649_v48 }
 0x1ea   : > { %v426_v52 = vadd.f32 %v425_v49, %v422_v51 }
 0x1eb   : > { %v651_v53 = vpop.eup %650 }
 0x1ec   : > { %v407_v54 = vmul.f32 0.6931472, %v651_v53  ;;  %v427_v55 = vsub.f32 %v421_v50, %v426_v52 }
 0x1ee   : > { %v408_v58 = vadd.f32 %v407_v54, %v404_v57  ;;  %v588_v60 = vclamps-f32 %v427_v55, 100000.0 }
 0x1f0   : > { %v409_v59 = vsub.f32 %v403_v56, %v408_v58  ;;  %v430_v0 = vmul.f32 %v588_v60, %v402_v61 }
 0x1f2   : > { %v410_v62 = vmul.f32 %v409_v59, %v402_v61  ;;  %v431_v1 = vsel %vm327_vm0, %v430_v0, 0.0 }
 0x1f4   : > { %v411_v63 = vsel %vm327_vm0, %v410_v62, 0.0 }
 0x1f5   : > { %412 = vadd.xlane.f32.xlu1 %v411_v63 }
 0x1f9   : > { %432 = vadd.xlane.f32.xlu1 %v431_v1 }
 0x282   : > { %v413_v2 = vpop.xlane.xlu1 %412 }
 0x283   : > { %v414_v3 = vrot.slane %v413_v2, 4 }
 0x285   : > { %v415_v4 = vadd.f32 %v414_v3, %v413_v2 }
 0x286   : > { %v433_v5 = vpop.xlane.xlu1 %432 }
 0x287   : > { %v416_v6 = vrot.slane %v415_v4, 2  ;;  %v434_v7 = vrot.slane %v433_v5, 4 }
 0x289   : > { %v435_v8 = vadd.f32 %v434_v7, %v433_v5  ;;  %v417_v9 = vadd.f32 %v416_v6, %v415_v4 }
 0x28b   : > { %v436_v10 = vrot.slane %v435_v8, 2  ;;  %v418_v11 = vrot.slane %v417_v9, 1 }
 0x28d   : > { %v437_v12 = vadd.f32 %v436_v10, %v435_v8  ;;  %v419_v13 = vadd.f32 %v418_v11, %v417_v9 }
 0x28f   : > { %591 = vpush %v419_v13  ;;  %v438_v14 = vrot.slane %v437_v12, 1 }
 0x291   : > { %v439_v15 = vadd.f32 %v438_v14, %v437_v12 }
 0x293   : > { %593 = vpush %v439_v15 }
 0x2c0   : > { %s592_s23 = spop %591 }
 0x2c4   : > { %s594_s24 = spop %593 }
 0x2c5   : > { %s441_s25 = ssub.f32 %s592_s23, %s594_s24 }
 0x2c7   : > { %s446_s26 = sand.u32 2147483647, %s441_s25  ;;  %s444_s6 = smul.f32 %s442_s29, %s441_s25 }
 0x2c8   : > { %s447_s27 = ssub.f32 0.0, %s446_s26  ;;  %s443_s8 = smax.f32 %s703_s7, %s441_s25 }
 0x2c9   : > { %s445_s9 = ssub.f32 %s443_s8, %s444_s6 }
 0x2ca   : > { %v448_v16 = vstv %s447_s27 }
 0x2cb   : > { %v449_v17 = vmul.f32 1.442695, %v448_v16 }
 0x2cd   : > { %652 = vpow2.f32 %v449_v17 }
 0x2d7   : > { %v653_v18 = vpop.eup %652 }
 0x2d8   : > { %595 = vpush %v653_v18 }
 0x309   : > { %s596_s28 = spop %595 }
 0x30a   : > { %v452_v19 = vstv %s596_s28 }
 0x30b   : > { %v453_v20 = vadd.f32 1.0, %v452_v19  ;;  %v456_v21 = vmul.f32 -0.5, %v452_v19  ;;  %v459_v23 = vand.u32 2147483647, %v452_v19 }
 0x30d   : > { %654 = vlog2.f32 %v453_v20  ;;  %v457_v22 = vadd.f32 1.0, %v456_v21  ;;  %vm460_vm3 = vcmp.lt.f32.partialorder %v459_v23, 0.0004427343 }
 0x30f   : > { %v458_v25 = vmul.f32 %v457_v22, %v452_v19 }
 0x317   : > { %v655_v24 = vpop.eup %654 }
 0x318   : > { %v455_v26 = vmul.f32 0.6931472, %v655_v24 }
 0x31a   : > { %v461_v27 = vsel %vm460_vm3, %v458_v25, %v455_v26 }
 0x31b   : > { %597 = vpush %v461_v27 }
 0x34c   : > { %s598_s10 = spop %597 }
 0x34d   : > { %s463_s14 = sadd.f32 %s598_s10, %s445_s9 }
 0x34f   : > { %v464_v28 = vstv %s463_s14 }
 0x350   : > { %466 = vst.msk [vmem:[%s316_s13] sm:$0x1] %vm465_vm4, %v464_v28 }
 0x351 PF: > { %s16_s20 = sadd.s32 1, %s697_s20   ;;  %s835_s18 = smov %s693_s19 }
 0x352   : > { %p13_p2 = scmp.ge.s32.totalorder %s16_s20, 4   ;;  %s836_s19 = smov %s838_s22 }
 0x354   :  { %15 = sbr.rel (!%p13_p2) target bundleno = 2 (0x2), region = 92 }
 0x35b   :  { %484 = vsyncpa [#allocation9], 1 }
 0x35c   :  { %486 = vsyncpa [#allocation9 + $0x1], 1 }

</bundles_post_ra>
